<compile_context>
chip_gen: v7x
topology: tpu7x:2x2x1
jax: 0.10.0
libtpu: 0.0.40
codegen_flags: <defaults>
</compile_context>

<pallas_src>
import functools

import jax
import jax.numpy as jnp
from jax.experimental import pallas as pl
from jax.experimental.pallas import tpu as pltpu


def _round_up(x: int, m: int) -> int:
    return ((x + m - 1) // m) * m


def _tile_candidates(n: int, cap: int):
    """Multiples of 128 that evenly divide n (n is a multiple of 128), descending."""
    cands = [n] if n <= cap else []
    v = (min(cap, n) // 128) * 128
    while v >= 128:
        if n % v == 0 and v not in cands:
            cands.append(v)
        v -= 128
    return cands


# ----------------------------------------------------------------------------
# Kernels
# ----------------------------------------------------------------------------
def _linear_kernel_fullk(x_ref, w_ref, b_ref, o_ref):
    # Single full-H pass: o = x @ w + b   (f32 MXU accumulation, f32 bias add).
    acc = jnp.dot(x_ref[...], w_ref[...], preferred_element_type=jnp.float32)
    o_ref[...] = (acc + b_ref[...]).astype(o_ref.dtype)


def _linear_kernel_ktiled_f32out(x_ref, w_ref, b_ref, o_ref):
    # K-tiled, f32 output: accumulate directly into the output tile (it is
    # VMEM-resident across the K axis) — no scratch accumulator needed.
    k = pl.program_id(2)

    @pl.when(k == 0)
    def _():
        o_ref[...] = jnp.zeros_like(o_ref)

    o_ref[...] += jnp.dot(x_ref[...], w_ref[...], preferred_element_type=jnp.float32)

    @pl.when(k == pl.num_programs(2) - 1)
    def _():
        o_ref[...] = o_ref[...] + b_ref[...]


def _linear_kernel_ktiled_acc(x_ref, w_ref, b_ref, o_ref, acc_ref):
    # K-tiled, non-f32 output: f32 VMEM accumulator, bias + cast on last step.
    k = pl.program_id(2)

    @pl.when(k == 0)
    def _():
        acc_ref[...] = jnp.zeros_like(acc_ref)

    acc_ref[...] += jnp.dot(x_ref[...], w_ref[...], preferred_element_type=jnp.float32)

    @pl.when(k == pl.num_programs(2) - 1)
    def _():
        o_ref[...] = (acc_ref[...] + b_ref[...]).astype(o_ref.dtype)


# ----------------------------------------------------------------------------
# One-time parameter preparation (outside the per-step hot path)
# ----------------------------------------------------------------------------
def prepare_linear_params(weight, bias, *, compute_dtype=None):
    """Prepare nn.Linear parameters once, offline.

    * pretranspose the PyTorch-layout (C, H) weight to (H, C) so the in-kernel
      contraction is a plain row-major matmul (no per-step transpose),
    * pad H, C up to multiples of 128 (lane-dense output / MXU alignment),
    * optionally cast the weight to a narrower compute dtype (bf16 halves the
      dominant HBM weight stream; on v7x fp8 is also an option),
    * keep the bias in f32 (added after the f32 MXU accumulation).
    """
    C, H = weight.shape
    assert bias.shape == (C,)
    Hp, Cp = _round_up(H, 128), _round_up(C, 128)
    w = weight if compute_dtype is None else weight.astype(compute_dtype)
    w_hc = jnp.pad(w, ((0, Cp - C), (0, Hp - H))).T  # materialized (Hp, Cp) once
    b2d = jnp.pad(bias.astype(jnp.float32), (0, Cp - C)).reshape(1, Cp)
    return w_hc, b2d


# ----------------------------------------------------------------------------
# Forward pass
# ----------------------------------------------------------------------------
def classification_forward(x, w_hc, b2d, *, n_classes=None,
                           vmem_budget_bytes=40 * 1024 * 1024):
    """Linear forward: x @ W.T + b, with W prepared by `prepare_linear_params`.

    x:     (B, H)   activations (cast to w_hc.dtype at the HBM boundary)
    w_hc:  (Hp, Cp) pretransposed, 128-padded, compute-dtype weight
    b2d:   (1, Cp)  f32 bias
    Returns (B, n_classes) in x.dtype.

    The 40 MiB VMEM budget is chosen for the tightest chip (v7x: 64 MiB/TC);
    v5e/v6e have 128 MiB physical, so the same config is safe everywhere.
    """
    B, H = x.shape
    Hp, Cp = w_hc.shape
    assert Hp % 128 == 0 and Cp % 128 == 0 and Hp >= H
    assert b2d.shape == (1, Cp)
    C = int(n_classes) if n_classes is not None else Cp

    cdtype = w_hc.dtype                    # compute / HBM-stream dtype
    odtype = x.dtype                       # output dtype follows activations
    esize, osize = cdtype.itemsize, odtype.itemsize
    sub = max(8, 32 // esize)              # min sublane: f32->8, bf16->16, 8-bit->32

    # --- tile selection ------------------------------------------------------
    # tm = full padded batch so the (H, C) weight is read from HBM exactly once
    # (the head is HBM-bound at typical batch sizes); capped to bound the x tile.
    tm = min(_round_up(B, sub), 2048)
    Bp = _round_up(B, tm)

    def footprint(tk, tn):
        f = (2 * tm * tk * esize           # x double-buffer
             + 2 * tk * tn * esize         # weight double-buffer
             + 2 * tn * 4                  # bias double-buffer
             + 2 * tm * tn * osize)        # output double-buffer
        if tk < Hp and odtype != jnp.float32:
            f += tm * tn * 4               # f32 accumulator scratch
        return f

    tk_cands = _tile_candidates(Hp, cap=Hp)      # full-H first: no K loop / acc
    tn_cands = _tile_candidates(Cp, cap=2048)
    if Cp >= 256:                                # v7x megacore: >=2 class blocks
        tn_cands = [t for t in tn_cands if t <= Cp // 2] or [128]

    tk, tn = 128, 128
    for tk_c in tk_cands:
        hit = next((tn_c for tn_c in tn_cands
                    if footprint(tk_c, tn_c) <= vmem_budget_bytes), None)
        if hit is not None:
            tk, tn = tk_c, hit
            break

    # --- per-call activation prep (weight/bias were prepared once, offline) ---
    xc = x.astype(cdtype)
    if (Bp, Hp) != (B, H):
        xc = jnp.pad(xc, ((0, Bp - B), (0, Hp - H)))

    gi, gj, gk = Bp // tm, Cp // tn, Hp // tk
    cost = pl.CostEstimate(
        flops=2 * Bp * Hp * Cp,
        transcendentals=0,
        bytes_accessed=int(gj * Bp * Hp * esize      # x re-read per class tile
                           + gi * Hp * Cp * esize    # weight re-read per batch tile
                           + gi * Cp * 4             # bias
                           + Bp * Cp * osize),       # output write
    )
    vmem_limit = int(max(32 * 1024 * 1024, footprint(tk, tn) + 8 * 1024 * 1024))

    if gk == 1:
        # Single full-H pass: no K grid axis, no accumulator.
        grid = (gi, gj)
        kernel = _linear_kernel_fullk
        in_specs = [
            pl.BlockSpec((tm, Hp), lambda i, j: (i, 0)),     # x
            # TODO(synk): if profiling shows exposed weight DMA, try
            # pipeline_mode=pl.Buffered(3) on this spec.
            pl.BlockSpec((Hp, tn), lambda i, j: (0, j)),     # weight (H, C)
            pl.BlockSpec((1, tn), lambda i, j: (0, j)),      # bias
        ]
        out_specs = pl.BlockSpec((tm, tn), lambda i, j: (i, j))
        scratch_shapes = []
        dims = ("parallel", "parallel")
    else:
        grid = (gi, gj, gk)
        in_specs = [
            pl.BlockSpec((tm, tk), lambda i, j, k: (i, k)),  # x
            pl.BlockSpec((tk, tn), lambda i, j, k: (k, j)),  # weight (H, C)
            pl.BlockSpec((1, tn), lambda i, j, k: (0, j)),   # bias
        ]
        out_specs = pl.BlockSpec((tm, tn), lambda i, j, k: (i, j))
        dims = ("parallel", "parallel", "arbitrary")
        if odtype == jnp.float32:
            kernel = _linear_kernel_ktiled_f32out            # accumulate in o_ref
            scratch_shapes = []
        else:
            kernel = _linear_kernel_ktiled_acc
            scratch_shapes = [pltpu.VMEM((tm, tn), jnp.float32)]

    out_padded = pl.pallas_call(
        kernel,
        out_shape=jax.ShapeDtypeStruct((Bp, Cp), odtype),
        grid=grid,
        in_specs=in_specs,
        out_specs=out_specs,
        scratch_shapes=scratch_shapes,
        compiler_params=pltpu.CompilerParams(
            dimension_semantics=dims,
            vmem_limit_bytes=vmem_limit,
        ),
        cost_estimate=cost,
    )(xc, w_hc, b2d)

    if (Bp, Cp) != (B, C):
        out_padded = out_padded[:B, :C]
    return out_padded


if __name__ == "__main__":
    # Small shapes consistent with the module: hidden=32, n_classes=16, batch=8.
    batch, hidden, n_classes = 8, 32, 16

    key = jax.random.PRNGKey(0)
    k_x, k_w, k_b = jax.random.split(key, 3)

    x = jax.random.normal(k_x, (batch, hidden), dtype=jnp.float32)
    # Deterministic init mimicking nn.Linear's uniform(-1/sqrt(H), 1/sqrt(H)).
    bound = 1.0 / (hidden ** 0.5)
    weight = jax.random.uniform(
        k_w, (n_classes, hidden), minval=-bound, maxval=bound, dtype=jnp.float32
    )
    bias = jax.random.uniform(
        k_b, (n_classes,), minval=-bound, maxval=bound, dtype=jnp.float32
    )

    # One-time parameter prep (outside the jitted hot path).  For realistic,
    # memory-bound heads pass compute_dtype=jnp.bfloat16 here.
    w_hc, b2d = prepare_linear_params(weight, bias)

    fwd = jax.jit(functools.partial(classification_forward, n_classes=n_classes))
    out = jax.block_until_ready(fwd(x, w_hc, b2d))

    # Sanity check against plain-JAX reference.
    ref = x @ weight.T + bias
    assert out.shape == (batch, n_classes)
    assert jnp.allclose(out, ref, atol=1e-5, rtol=1e-5)

    print("KERNEL_OK")
</pallas_src>

<mosaic_0001>
module attributes {stable_mosaic.version = 11 : i64} {
  func.func @_linear_kernel_fullk(%arg0: i32, %arg1: i32, %arg2: memref<8x128xf32, #tpu.memory_space<vmem>>, %arg3: memref<128x128xf32, #tpu.memory_space<vmem>>, %arg4: memref<1x128xf32, #tpu.memory_space<vmem>>, %arg5: memref<8x128xf32, #tpu.memory_space<vmem>>) attributes {dimension_semantics = [#tpu.dimension_semantics<parallel>, #tpu.dimension_semantics<parallel>], iteration_bounds = array<i64: 1, 1>, scalar_prefetch = 0 : i64, scratch_operands = 0 : i64, tpu.core_type = #tpu.core_type<tc>, window_params = [{transform_indices = @transform_0, window_bounds = array<i64: 8, 128>}, {transform_indices = @transform_1, window_bounds = array<i64: 128, 128>}, {transform_indices = @transform_2, window_bounds = array<i64: 1, 128>}, {transform_indices = @transform_3, window_bounds = array<i64: 8, 128>}]} {
    %c0 = arith.constant 0 : index
    %c0_0 = arith.constant 0 : index
    %0 = vector.load %arg2[%c0, %c0_0] : memref<8x128xf32, #tpu.memory_space<vmem>>, vector<8x128xf32>
    %c0_1 = arith.constant 0 : index
    %c0_2 = arith.constant 0 : index
    %1 = vector.load %arg3[%c0_1, %c0_2] : memref<128x128xf32, #tpu.memory_space<vmem>>, vector<128x128xf32>
    %cst = arith.constant dense<0.000000e+00> : vector<8x128xf32>
    %2 = tpu.matmul %0, %1, %cst {dimension_numbers = #tpu.dot_dimension_numbers<[1], [0], [0], [1], [0, 0, 1, 1], [], []>} : vector<8x128xf32>, vector<128x128xf32>, vector<8x128xf32> -> vector<8x128xf32>
    %c0_3 = arith.constant 0 : index
    %c0_4 = arith.constant 0 : index
    %3 = vector.load %arg4[%c0_3, %c0_4] : memref<1x128xf32, #tpu.memory_space<vmem>>, vector<1x128xf32>
    %4 = vector.broadcast %3 : vector<1x128xf32> to vector<8x128xf32>
    %5 = arith.addf %2, %4 : vector<8x128xf32>
    %c0_5 = arith.constant 0 : index
    %c0_6 = arith.constant 0 : index
    %6 = vector.load %arg5[%c0_5, %c0_6] : memref<8x128xf32, #tpu.memory_space<vmem>>, vector<8x128xf32>
    tpu.vector_store %arg5[%c0_5, %c0_6], %5 {strides = array<i32>} : memref<8x128xf32, #tpu.memory_space<vmem>>, vector<8x128xf32>,
    return
  }
  func.func @transform_0(%arg0: i32, %arg1: i32) -> (i32, i32) {
    %c0_i32 = arith.constant 0 : i32
    %c0_i32_0 = arith.constant 0 : i32
    return %arg0, %c0_i32 : i32, i32
  }
  func.func @transform_1(%arg0: i32, %arg1: i32) -> (i32, i32) {
    %c0_i32 = arith.constant 0 : i32
    %c0_i32_0 = arith.constant 0 : i32
    return %c0_i32, %arg1 : i32, i32
  }
  func.func @transform_2(%arg0: i32, %arg1: i32) -> (i32, i32) {
    %c0_i32 = arith.constant 0 : i32
    %c0_i32_0 = arith.constant 0 : i32
    return %c0_i32, %arg1 : i32, i32
  }
  func.func @transform_3(%arg0: i32, %arg1: i32) -> (i32, i32) {
    %c0_i32 = arith.constant 0 : i32
    return %arg0, %arg1 : i32, i32
  }
}

</mosaic_0001>

<bundles_post_ra>
// kernel: classification_forward.1
= control target key start
LH: loop header
LB: loop body
LE: loop exit
PB: predicated region body
PF: predicated region fallthrough
CT: control target
= control target key end

     0   :  { %8 = vsyncpa [#allocation3], 0  ;;  %s328_s0 = inlined_call_operand.vmem [shape: f32[8,128], index: 0, kind: input, shape index: {}]   ;;  %s329_s1 = inlined_call_operand.hbm [shape: f32[128,128], index: 1, kind: input, shape index: {}]   ;;  %s330_s2 = inlined_call_operand.vmem [shape: f32[1,128], index: 2, kind: input, shape index: {}]   ;;  %s331_s3 = inlined_call_operand.hbm [shape: f32[8,128], index: 3, kind: output, shape index: {}]  }
   0x1   :  { %9 = vsyncpa [#allocation4], 0  ;;  %s271_s12 = smov [#allocation2]   ;;  %s223_s16 = scalar_lea.hbm %s329_s1, 2048 }
   0x2   :  { %s17_s13 = sshll.u32 %s271_s12, 4  ;;  %p224_p0 = scmp.ne.s32.totalorder %s329_s1, %s223_s16  ;;  %s18_s13 = int_to_ptr.vmem [resolvable:$true] %s17_s13 }
   0x3   :  { %p227_p1 = scmp.lt.u32.totalorder %s223_s16, %s329_s1 }
   0x5   :  { %p229_p2 = pnand %p227_p1, %p224_p0 }
   0x7   :  { %232 = shalt.err (!%p229_p2)
}
   0x8   :  { %s233_s21 = scalar_lea.vmem %s18_s13, 2048  ;;  %p238_p4 = scmp.lt.s32.totalorder %s18_s13, %s18_s13 }
   0x9   :  { %p234_p3 = scmp.ne.s32.totalorder %s18_s13, %s233_s21  ;;  %p239_p5 = scmp.lt.s32.totalorder %s233_s21, %s233_s21 }
   0xb   :  { %p240_p6 = por %p239_p5, %p238_p4 }
   0xd   :  { %p241_p7 = pnand %p240_p6, %p234_p3 }
   0xf   :  { %244 = shalt.err (!%p241_p7)
}
  0x10   :  { %s272_s22 = smov 128   ;;  %s273_s23 = smov 8  }
  0x11   :  { %23 = dma.hbm_to_vmem [thread:$0]  %s329_s1, 2048, %s18_s13, [#allocation3], %s272_s22, %s272_s22, %s273_s23  }
  0x12   :  { %267 = dma.done.wait [#allocation3], 2048  }
  0x13   :  { %268 = vsyncadd [#allocation3], 4294965248  ;;  %v274_v0 = vmov 0.0|0.0   ;;  %vm275_vm0 = vmmov 0   ;;  %v276_v1 = vmov 0.0   ;;  %v30_v2 = vld [vmem:[#allocation2] sm:$0xff] }
  0x14   :  { %192 = vmatprep.subr.bf16.mxu0 %v274_v0  ;;  %189 = vmatprep.mubr.msk.f32.mxu0 %vm275_vm0, %v276_v1  ;;  %v31_v3 = vld [vmem:[#allocation2 + $0x8] sm:$0xff]  ;;  %v32_v4 = vld [vmem:[#allocation2 + $0x10] sm:$0xff]  ;;  %v33_v6 = vld [vmem:[#allocation2 + $0x18] sm:$0xff]  ;;  %s277_s29 = smov [#allocation5]  }
  0x15   :  { %v193_v5 = vpack.c.bf16 %v31_v3, %v30_v2  ;;  %v196_v7 = vpack.c.bf16 %v33_v6, %v32_v4  ;;  %v34_v8 = vld [vmem:[#allocation2 + $0x20] sm:$0xff]  ;;  %v35_v9 = vld [vmem:[#allocation2 + $0x28] sm:$0xff]  ;;  %v36_v11 = vld [vmem:[#allocation2 + $0x30] sm:$0xff]  ;;  %s130_s30 = sshll.u32 %s277_s29, 4  ;;  %s131_s30 = int_to_ptr.vmem [resolvable:$true] %s130_s30 }
  0x16   :  { %v199_v10 = vpack.c.bf16 %v35_v9, %v34_v8  ;;  %v37_v12 = vld [vmem:[#allocation2 + $0x38] sm:$0xff]  ;;  %v38_v14 = vld [vmem:[#allocation2 + $0x40] sm:$0xff]  ;;  %v39_v15 = vld [vmem:[#allocation2 + $0x48] sm:$0xff]  ;;  %s245_s4 = scalar_lea.vmem %s131_s30, 128  ;;  %p250_p9 = scmp.lt.s32.totalorder %s131_s30, %s131_s30 }
  0x17   :  { %194 = vmatpush3.bf16.msra.mxu0 %v193_v5  ;;  %v202_v13 = vpack.c.bf16 %v37_v12, %v36_v11  ;;  %v205_v16 = vpack.c.bf16 %v39_v15, %v38_v14  ;;  %v40_v17 = vld [vmem:[#allocation2 + $0x50] sm:$0xff]  ;;  %v41_v18 = vld [vmem:[#allocation2 + $0x58] sm:$0xff]  ;;  %v42_v20 = vld [vmem:[#allocation2 + $0x60] sm:$0xff]  ;;  %p246_p8 = scmp.ne.s32.totalorder %s131_s30, %s245_s4  ;;  %p251_p10 = scmp.lt.s32.totalorder %s245_s4, %s245_s4 }
  0x18   :  { %195 = vmatprep.subr.bf16.mxu0 %v274_v0  ;;  %v208_v19 = vpack.c.bf16 %v41_v18, %v40_v17  ;;  %v43_v21 = vld [vmem:[#allocation2 + $0x68] sm:$0xff]  ;;  %v44_v23 = vld [vmem:[#allocation2 + $0x70] sm:$0xff]  ;;  %v45_v24 = vld [vmem:[#allocation2 + $0x78] sm:$0xff] }
  0x19   :  { %v211_v22 = vpack.c.bf16 %v43_v21, %v42_v20  ;;  %v214_v25 = vpack.c.bf16 %v45_v24, %v44_v23  ;;  %v29_v26 = vld [vmem:[%s328_s0] sm:$0xff]  ;;  %p252_p11 = por %p251_p10, %p250_p9 }
  0x1a   :  { %v139_v27 = vld [vmem:[%s330_s2] ss:$0 sm:$0xff] }
  0x1b   :  { %197 = vmatpush3.bf16.msra.mxu0 %v196_v7  ;;  %p253_p12 = pnand %p252_p11, %p246_p8 }
  0x1c   :  { %198 = vmatprep.subr.bf16.mxu0 %v274_v0 }
  0x1f   :  { %200 = vmatpush3.bf16.msra.mxu0 %v199_v10 }
  0x20   :  { %201 = vmatprep.subr.bf16.mxu0 %v274_v0 }
  0x23   :  { %203 = vmatpush3.bf16.msra.mxu0 %v202_v13 }
  0x24   :  { %204 = vmatprep.subr.bf16.mxu0 %v274_v0 }
  0x27   :  { %206 = vmatpush3.bf16.msra.mxu0 %v205_v16 }
  0x28   :  { %207 = vmatprep.subr.bf16.mxu0 %v274_v0 }
  0x2b   :  { %209 = vmatpush3.bf16.msra.mxu0 %v208_v19 }
  0x2c   :  { %210 = vmatprep.subr.bf16.mxu0 %v274_v0 }
  0x2f   :  { %212 = vmatpush3.bf16.msra.mxu0 %v211_v22 }
  0x30   :  { %213 = vmatprep.subr.bf16.mxu0 %v274_v0 }
  0x33   :  { %215 = vmatpush3.bf16.msra.mxu0 %v214_v25 }
  0x36   :  { %190 = vmatmul.mubr.f32.vlgmr.msra.gmra.mrb[0].mxu0 %v29_v26 }
 0x109   :  { %v119_v28 = vpop.f32.mrb[0].mxu0 }
 0x10a   :  { %v120_v29 = vadd.f32 %v139_v27, %v119_v28  ;;  %v191_v30 = vpop.f32.mrb[1].mxu0 }
 0x10c   :  { %123 = vst [vmem:[#allocation5] sm:$0xff] %v120_v29 }
 0x10d   :  { %256 = shalt.err (!%p253_p12)
}
 0x10e   :  { %s257_s6 = scalar_lea.hbm %s331_s3, 128 }
 0x10f   :  { %p258_p13 = scmp.ne.s32.totalorder %s331_s3, %s257_s6  ;;  %p261_p0 = scmp.lt.u32.totalorder %s257_s6, %s331_s3 }
 0x111   :  { %p263_p1 = pnand %p261_p0, %p258_p13 }
 0x113   :  { %266 = shalt.err (!%p263_p1)
}
 0x114   :  { %133 = dma.vmem_to_hbm [thread:$0]  %s131_s30, 128, %s331_s3, [#allocation4]  }
 0x115   :  { %269 = dma.done.wait [#allocation4], 128  }
 0x116   :  { %270 = vsyncadd [#allocation4], 4294967168 }
 0x117   :  { %137 = vsyncpa [#allocation3], 1 }
 0x118   :  { %138 = vsyncpa [#allocation4], 1 }

</bundles_post_ra>
